<compile_context>
chip_gen: v7x
topology: tpu7x:2x2x1
jax: 0.10.0
libtpu: 0.0.40
codegen_flags: <defaults>
</compile_context>

<pallas_src>
import jax
import jax.numpy as jnp
from jax.experimental import pallas as pl
from jax.experimental.pallas import tpu as pltpu


OUT_PAD = 8        # pad the 7-wide output to 8 lanes (sublane-aligned, packed rows)
TB_MAX = 4096      # max rows per batch tile (fits v7x 32 MiB scoped VMEM easily)
MIN_GRID_STEPS = 4  # keep >= 4 grid steps for large batches (v7x megacore + pipeline)


def _round_up(n, m):
    return ((n + m - 1) // m) * m


def basenet_kernel(x_ref,
                   w1_ref, b1_ref,
                   w2_ref, b2_ref,
                   w3_ref, b3_ref,
                   w4_ref, b4_ref,
                   out_ref):
    # layer1 + ReLU (bf16 MXU inputs, f32 accumulation)
    h = jnp.dot(x_ref[...].astype(jnp.bfloat16), w1_ref[...],
                preferred_element_type=jnp.float32)
    h = jnp.maximum(h + b1_ref[...], 0.0)
    # layer2 + ReLU
    h = jnp.dot(h.astype(jnp.bfloat16), w2_ref[...],
                preferred_element_type=jnp.float32)
    h = jnp.maximum(h + b2_ref[...], 0.0)
    # layer3 + ReLU
    h = jnp.dot(h.astype(jnp.bfloat16), w3_ref[...],
                preferred_element_type=jnp.float32)
    h = jnp.maximum(h + b3_ref[...], 0.0)
    # layer4 (no activation); output lanes padded to OUT_PAD=8
    o = jnp.dot(h.astype(jnp.bfloat16), w4_ref[...],
                preferred_element_type=jnp.float32)
    out_ref[...] = (o + b4_ref[...]).astype(out_ref.dtype)


def init_params(key):
    """Deterministic f32 parameters matching nn.Linear's default init scheme.

    PyTorch nn.Linear(i, o) has weight (o, i); we store the transpose (i, o).
    """
    dims = [(9, 64), (64, 256), (256, 64), (64, 7)]
    names = ["layer1", "layer2", "layer3", "layer4"]
    params = {}
    for name, (fan_in, fan_out) in zip(names, dims):
        key, kw, kb = jax.random.split(key, 3)
        bound = 1.0 / jnp.sqrt(fan_in)
        w = jax.random.uniform(kw, (fan_in, fan_out), jnp.float32, -bound, bound)
        b = jax.random.uniform(kb, (fan_out,), jnp.float32, -bound, bound)
        params[name] = (w, b)
    return params


def prepare_params(params_f32):
    """Kernel-ready params: bf16 weights, f32 (1, out) biases,
    layer4 zero-padded from 7 to OUT_PAD (=8) output lanes."""
    prepared = {}
    for name, (w, b) in params_f32.items():
        w = w.astype(jnp.bfloat16)
        b = b.reshape(1, -1).astype(jnp.float32)
        if name == "layer4":
            w = jnp.pad(w, ((0, 0), (0, OUT_PAD - w.shape[1])))
            b = jnp.pad(b, ((0, 0), (0, OUT_PAD - b.shape[1])))
        prepared[name] = (w, b)
    return prepared


def _choose_tile(B):
    """Pick the batch tile size.

    Small batches: one tile (rounded to a sublane multiple).
    Large batches: big tiles (up to TB_MAX) but capped so the grid keeps at
    least MIN_GRID_STEPS steps -> both v7x TensorCores get work and the
    software pipeline has depth.  Irrelevant for v5e/v6e (1 TC).
    """
    b8 = _round_up(B, 8)
    if b8 <= TB_MAX:
        return b8
    tb = min(TB_MAX, _round_up(pl.cdiv(B, MIN_GRID_STEPS), 8))
    return tb


def basenet_forward(x, prepared):
    """x: (B, 9) float32; prepared: output of prepare_params. Returns (B, 7) f32."""
    w1, b1 = prepared["layer1"]
    w2, b2 = prepared["layer2"]
    w3, b3 = prepared["layer3"]
    w4, b4 = prepared["layer4"]

    B, feat = x.shape
    assert feat == 9, feat

    # Pad the batch so the tail tile never reads/writes out of range.
    tb = _choose_tile(B)
    b_pad = _round_up(B, tb)
    if b_pad != B:
        x = jnp.pad(x, ((0, b_pad - B), (0, 0)))
    grid = (b_pad // tb,)

    def resident(shape):
        # Full-array block with constant index -> DMA'd once, stays in VMEM.
        return pl.BlockSpec(shape, lambda i: (0, 0))

    # Advisory cost estimate (rows actually processed = b_pad; 8-lane output).
    flops = 2 * b_pad * (9 * 64 + 64 * 256 + 256 * 64 + 64 * 7)
    weight_bytes = sum(w.size * w.dtype.itemsize + b.size * b.dtype.itemsize
                       for w, b in prepared.values())
    bytes_accessed = weight_bytes + b_pad * (9 + OUT_PAD) * 4

    out = pl.pallas_call(
        basenet_kernel,
        out_shape=jax.ShapeDtypeStruct((b_pad, OUT_PAD), jnp.float32),
        grid=grid,
        in_specs=[
            pl.BlockSpec((tb, 9), lambda i: (i, 0)),  # x: batch-tiled
            resident(w1.shape), resident(b1.shape),
            resident(w2.shape), resident(b2.shape),
            resident(w3.shape), resident(b3.shape),
            resident(w4.shape), resident(b4.shape),
        ],
        out_specs=pl.BlockSpec((tb, OUT_PAD), lambda i: (i, 0)),
        compiler_params=pltpu.CompilerParams(
            dimension_semantics=("parallel",),
            vmem_limit_bytes=32 * 1024 * 1024),
        cost_estimate=pl.CostEstimate(
            flops=flops, transcendentals=0, bytes_accessed=bytes_accessed),
    )(x, w1, b1, w2, b2, w3, b3, w4, b4)

    return out[:B, :7]


def reference_forward(x, prepared):
    """Pure-JAX mirror of the kernel math (bf16 weights/activations, f32 acc)."""
    h = x
    for name in ["layer1", "layer2", "layer3"]:
        w, b = prepared[name]
        h = jnp.dot(h.astype(jnp.bfloat16), w, preferred_element_type=jnp.float32)
        h = jnp.maximum(h + b, 0.0)
    w, b = prepared["layer4"]
    o = jnp.dot(h.astype(jnp.bfloat16), w, preferred_element_type=jnp.float32) + b
    return o[:, :7]


if __name__ == "__main__":
    key = jax.random.PRNGKey(0)
    key, kx = jax.random.split(key)

    B = 13  # deliberately not a multiple of 8 to exercise the padded tail path
    x = jax.random.normal(kx, (B, 9), jnp.float32)

    params = init_params(key)
    prepared = prepare_params(params)

    out = jax.block_until_ready(basenet_forward(x, prepared))
    ref = reference_forward(x, prepared)

    assert out.shape == (B, 7), out.shape
    assert jnp.allclose(out, ref, atol=1e-2, rtol=1e-2), "mismatch vs JAX reference"

    print("KERNEL_OK")
</pallas_src>

<mosaic_0001>
module attributes {stable_mosaic.version = 11 : i64} {
  func.func @basenet_kernel(%arg0: i32, %arg1: memref<16x9xf32, #tpu.memory_space<vmem>>, %arg2: memref<9x64xbf16, #tpu.memory_space<vmem>>, %arg3: memref<1x64xf32, #tpu.memory_space<vmem>>, %arg4: memref<64x256xbf16, #tpu.memory_space<vmem>>, %arg5: memref<1x256xf32, #tpu.memory_space<vmem>>, %arg6: memref<256x64xbf16, #tpu.memory_space<vmem>>, %arg7: memref<1x64xf32, #tpu.memory_space<vmem>>, %arg8: memref<64x8xbf16, #tpu.memory_space<vmem>>, %arg9: memref<1x8xf32, #tpu.memory_space<vmem>>, %arg10: memref<16x8xf32, #tpu.memory_space<vmem>>) attributes {dimension_semantics = [#tpu.dimension_semantics<parallel>], iteration_bounds = array<i64: 1>, scalar_prefetch = 0 : i64, scratch_operands = 0 : i64, tpu.core_type = #tpu.core_type<tc>, window_params = [{transform_indices = @transform_0, window_bounds = array<i64: 16, 9>}, {pipeline_mode = #tpu.pipeline_mode<synchronous>, transform_indices = @transform_1, window_bounds = array<i64: 9, 64>}, {pipeline_mode = #tpu.pipeline_mode<synchronous>, transform_indices = @transform_2, window_bounds = array<i64: 1, 64>}, {pipeline_mode = #tpu.pipeline_mode<synchronous>, transform_indices = @transform_3, window_bounds = array<i64: 64, 256>}, {pipeline_mode = #tpu.pipeline_mode<synchronous>, transform_indices = @transform_4, window_bounds = array<i64: 1, 256>}, {pipeline_mode = #tpu.pipeline_mode<synchronous>, transform_indices = @transform_5, window_bounds = array<i64: 256, 64>}, {pipeline_mode = #tpu.pipeline_mode<synchronous>, transform_indices = @transform_6, window_bounds = array<i64: 1, 64>}, {pipeline_mode = #tpu.pipeline_mode<synchronous>, transform_indices = @transform_7, window_bounds = array<i64: 64, 8>}, {pipeline_mode = #tpu.pipeline_mode<synchronous>, transform_indices = @transform_8, window_bounds = array<i64: 1, 8>}, {transform_indices = @transform_9, window_bounds = array<i64: 16, 8>}]} {
    %c0 = arith.constant 0 : index
    %c0_0 = arith.constant 0 : index
    %0 = vector.load %arg1[%c0, %c0_0] : memref<16x9xf32, #tpu.memory_space<vmem>>, vector<16x9xf32>
    %1 = arith.truncf %0 : vector<16x9xf32> to vector<16x9xbf16>
    %c0_1 = arith.constant 0 : index
    %c0_2 = arith.constant 0 : index
    %2 = vector.load %arg2[%c0_1, %c0_2] : memref<9x64xbf16, #tpu.memory_space<vmem>>, vector<9x64xbf16>
    %cst = arith.constant dense<0.000000e+00> : vector<16x64xf32>
    %3 = tpu.matmul %1, %2, %cst {dimension_numbers = #tpu.dot_dimension_numbers<[1], [0], [0], [1], [0, 0, 1, 1], [], []>} : vector<16x9xbf16>, vector<9x64xbf16>, vector<16x64xf32> -> vector<16x64xf32>
    %c0_3 = arith.constant 0 : index
    %c0_4 = arith.constant 0 : index
    %4 = vector.load %arg3[%c0_3, %c0_4] : memref<1x64xf32, #tpu.memory_space<vmem>>, vector<1x64xf32>
    %5 = vector.broadcast %4 : vector<1x64xf32> to vector<16x64xf32>
    %6 = arith.addf %3, %5 : vector<16x64xf32>
    %cst_5 = arith.constant 0.000000e+00 : f32
    %7 = vector.broadcast %cst_5 : f32 to vector<16x64xf32>
    %8 = arith.maximumf %6, %7 : vector<16x64xf32>
    %9 = arith.truncf %8 : vector<16x64xf32> to vector<16x64xbf16>
    %c0_6 = arith.constant 0 : index
    %c0_7 = arith.constant 0 : index
    %10 = vector.load %arg4[%c0_6, %c0_7] : memref<64x256xbf16, #tpu.memory_space<vmem>>, vector<64x256xbf16>
    %cst_8 = arith.constant dense<0.000000e+00> : vector<16x256xf32>
    %11 = tpu.matmul %9, %10, %cst_8 {dimension_numbers = #tpu.dot_dimension_numbers<[1], [0], [0], [1], [0, 0, 1, 1], [], []>} : vector<16x64xbf16>, vector<64x256xbf16>, vector<16x256xf32> -> vector<16x256xf32>
    %c0_9 = arith.constant 0 : index
    %c0_10 = arith.constant 0 : index
    %12 = vector.load %arg5[%c0_9, %c0_10] : memref<1x256xf32, #tpu.memory_space<vmem>>, vector<1x256xf32>
    %13 = vector.broadcast %12 : vector<1x256xf32> to vector<16x256xf32>
    %14 = arith.addf %11, %13 : vector<16x256xf32>
    %cst_11 = arith.constant 0.000000e+00 : f32
    %15 = vector.broadcast %cst_11 : f32 to vector<16x256xf32>
    %16 = arith.maximumf %14, %15 : vector<16x256xf32>
    %17 = arith.truncf %16 : vector<16x256xf32> to vector<16x256xbf16>
    %c0_12 = arith.constant 0 : index
    %c0_13 = arith.constant 0 : index
    %18 = vector.load %arg6[%c0_12, %c0_13] : memref<256x64xbf16, #tpu.memory_space<vmem>>, vector<256x64xbf16>
    %cst_14 = arith.constant dense<0.000000e+00> : vector<16x64xf32>
    %19 = tpu.matmul %17, %18, %cst_14 {dimension_numbers = #tpu.dot_dimension_numbers<[1], [0], [0], [1], [0, 0, 1, 1], [], []>} : vector<16x256xbf16>, vector<256x64xbf16>, vector<16x64xf32> -> vector<16x64xf32>
    %c0_15 = arith.constant 0 : index
    %c0_16 = arith.constant 0 : index
    %20 = vector.load %arg7[%c0_15, %c0_16] : memref<1x64xf32, #tpu.memory_space<vmem>>, vector<1x64xf32>
    %21 = vector.broadcast %20 : vector<1x64xf32> to vector<16x64xf32>
    %22 = arith.addf %19, %21 : vector<16x64xf32>
    %cst_17 = arith.constant 0.000000e+00 : f32
    %23 = vector.broadcast %cst_17 : f32 to vector<16x64xf32>
    %24 = arith.maximumf %22, %23 : vector<16x64xf32>
    %25 = arith.truncf %24 : vector<16x64xf32> to vector<16x64xbf16>
    %c0_18 = arith.constant 0 : index
    %c0_19 = arith.constant 0 : index
    %26 = vector.load %arg8[%c0_18, %c0_19] : memref<64x8xbf16, #tpu.memory_space<vmem>>, vector<64x8xbf16>
    %cst_20 = arith.constant dense<0.000000e+00> : vector<16x8xf32>
    %27 = tpu.matmul %25, %26, %cst_20 {dimension_numbers = #tpu.dot_dimension_numbers<[1], [0], [0], [1], [0, 0, 1, 1], [], []>} : vector<16x64xbf16>, vector<64x8xbf16>, vector<16x8xf32> -> vector<16x8xf32>
    %c0_21 = arith.constant 0 : index
    %c0_22 = arith.constant 0 : index
    %28 = vector.load %arg9[%c0_21, %c0_22] : memref<1x8xf32, #tpu.memory_space<vmem>>, vector<1x8xf32>
    %29 = vector.broadcast %28 : vector<1x8xf32> to vector<16x8xf32>
    %30 = arith.addf %27, %29 : vector<16x8xf32>
    %c0_23 = arith.constant 0 : index
    %c0_24 = arith.constant 0 : index
    %31 = vector.load %arg10[%c0_23, %c0_24] : memref<16x8xf32, #tpu.memory_space<vmem>>, vector<16x8xf32>
    tpu.vector_store %arg10[%c0_23, %c0_24], %30 {strides = array<i32>} : memref<16x8xf32, #tpu.memory_space<vmem>>, vector<16x8xf32>,
    return
  }
  func.func @transform_0(%arg0: i32) -> (i32, i32) {
    %c0_i32 = arith.constant 0 : i32
    %c0_i32_0 = arith.constant 0 : i32
    return %arg0, %c0_i32 : i32, i32
  }
  func.func @transform_1(%arg0: i32) -> (i32, i32) {
    %c0_i32 = arith.constant 0 : i32
    %c0_i32_0 = arith.constant 0 : i32
    %c0_i32_1 = arith.constant 0 : i32
    return %c0_i32, %c0_i32_0 : i32, i32
  }
  func.func @transform_2(%arg0: i32) -> (i32, i32) {
    %c0_i32 = arith.constant 0 : i32
    %c0_i32_0 = arith.constant 0 : i32
    %c0_i32_1 = arith.constant 0 : i32
    return %c0_i32, %c0_i32_0 : i32, i32
  }
  func.func @transform_3(%arg0: i32) -> (i32, i32) {
    %c0_i32 = arith.constant 0 : i32
    %c0_i32_0 = arith.constant 0 : i32
    %c0_i32_1 = arith.constant 0 : i32
    return %c0_i32, %c0_i32_0 : i32, i32
  }
  func.func @transform_4(%arg0: i32) -> (i32, i32) {
    %c0_i32 = arith.constant 0 : i32
    %c0_i32_0 = arith.constant 0 : i32
    %c0_i32_1 = arith.constant 0 : i32
    return %c0_i32, %c0_i32_0 : i32, i32
  }
  func.func @transform_5(%arg0: i32) -> (i32, i32) {
    %c0_i32 = arith.constant 0 : i32
    %c0_i32_0 = arith.constant 0 : i32
    %c0_i32_1 = arith.constant 0 : i32
    return %c0_i32, %c0_i32_0 : i32, i32
  }
  func.func @transform_6(%arg0: i32) -> (i32, i32) {
    %c0_i32 = arith.constant 0 : i32
    %c0_i32_0 = arith.constant 0 : i32
    %c0_i32_1 = arith.constant 0 : i32
    return %c0_i32, %c0_i32_0 : i32, i32
  }
  func.func @transform_7(%arg0: i32) -> (i32, i32) {
    %c0_i32 = arith.constant 0 : i32
    %c0_i32_0 = arith.constant 0 : i32
    %c0_i32_1 = arith.constant 0 : i32
    return %c0_i32, %c0_i32_0 : i32, i32
  }
  func.func @transform_8(%arg0: i32) -> (i32, i32) {
    %c0_i32 = arith.constant 0 : i32
    %c0_i32_0 = arith.constant 0 : i32
    %c0_i32_1 = arith.constant 0 : i32
    return %c0_i32, %c0_i32_0 : i32, i32
  }
  func.func @transform_9(%arg0: i32) -> (i32, i32) {
    %c0_i32 = arith.constant 0 : i32
    %c0_i32_0 = arith.constant 0 : i32
    return %arg0, %c0_i32 : i32, i32
  }
}

</mosaic_0001>

<bundles_post_ra>
// kernel: tpu_custom_call.1
= control target key start
LH: loop header
LB: loop body
LE: loop exit
PB: predicated region body
PF: predicated region fallthrough
CT: control target
= control target key end

     0   :  { %vm54_vm0 = vcmask 1043456   ;;  %vm55_vm1 = vcmask 1044480   ;;  %v606_v0 = vmov 0.0   ;;  %v607_v2 = vmov 65535   ;;  %s782_s1 = inlined_call_operand.vmem [shape: bf16[9,64], index: 1, kind: input, shape index: {}]   ;;  %s783_s0 = inlined_call_operand.vmem [shape: f32[16,9], index: 0, kind: input, shape index: {}]   ;;  %s784_s3 = inlined_call_operand.vmem [shape: bf16[64,256], index: 3, kind: input, shape index: {}]   ;;  %s785_s5 = inlined_call_operand.vmem [shape: bf16[256,64], index: 5, kind: input, shape index: {}]   ;;  %s786_s2 = inlined_call_operand.vmem [shape: f32[1,64], index: 2, kind: input, shape index: {}]   ;;  %s787_s7 = inlined_call_operand.vmem [shape: bf16[64,8], index: 7, kind: input, shape index: {}]   ;;  %s788_s4 = inlined_call_operand.vmem [shape: f32[1,256], index: 4, kind: input, shape index: {}]   ;;  %s789_s6 = inlined_call_operand.vmem [shape: f32[1,64], index: 6, kind: input, shape index: {}]   ;;  %s790_s8 = inlined_call_operand.vmem [shape: f32[1,8], index: 8, kind: input, shape index: {}]   ;;  %s791_s9 = inlined_call_operand.vmem [shape: f32[16,8], index: 9, kind: output, shape index: {}]  }
   0x1   :  { %551 = vmatprep.subr.bf16.mxu0 %v606_v0  ;;  %v573_v1 = vld [vmem:[%s782_s1] sm:$0x1f]   ;;  %v56_v3 = vsel %vm54_vm0, 4294967295, %v607_v2  ;;  %v34_v5 = vld [vmem:[%s783_s0 + $0x8] sm:$0xff]  ;;  %vm608_vm2 = vmmov 0   ;;  %vm50_vm3 = vcmask 72704   ;;  %v115_v45 = vlaneseq }
   0x2   :  { %v33_v4 = vld [vmem:[%s783_s0] sm:$0xff]  ;;  %v57_v6 = vsel %vm55_vm1, %v56_v3, 0  ;;  %553 = vmatprep.mubr.msk.bf16.mxu0 %vm608_vm2, %v606_v0  ;;  %v577_v10 = vld [vmem:[%s784_s3 + $0x14] ss:$8 sps:$4 sm:$0xff]   ;;  %v579_v12 = vld [vmem:[%s784_s3 + $0x10] ss:$8 sps:$4 sm:$0xff]  }
   0x3   :  { %v574_v7 = vld [vmem:[%s784_s3 + $0x4] ss:$8 sps:$4 sm:$0xff]   ;;  %v576_v8 = vld [vmem:[%s784_s3] ss:$8 sps:$4 sm:$0xff]   ;;  %v59_v9 = vand.u32 %v573_v1, %v57_v6  ;;  %v35_v11 = vpack.c.bf16 %v34_v5, %v33_v4  ;;  %v583_v15 = vld [vmem:[%s784_s3 + $0x34] ss:$8 sps:$4 sm:$0xff]  }
   0x4   :  { %169 = vmatprep.subr.bf16.mxu1 %v574_v7  ;;  %v580_v13 = vld [vmem:[%s784_s3 + $0x24] ss:$8 sps:$4 sm:$0xff]   ;;  %v582_v14 = vld [vmem:[%s784_s3 + $0x20] ss:$8 sps:$4 sm:$0xff]   ;;  %v585_v16 = vld [vmem:[%s784_s3 + $0x30] ss:$8 sps:$4 sm:$0xff]  }
   0x5   :  { %552 = vmatpush3.bf16.msra.mxu0 %v59_v9  ;;  %170 = vmatpush1.bf16.msra.mxu1 %v576_v8  ;;  %v609_v17 = vmov 0   ;;  %v586_v18 = vld [vmem:[%s785_s5 + $0x40] sm:$0xff]   ;;  %v588_v20 = vld [vmem:[%s785_s5 + $0x48] sm:$0xff]   ;;  %v590_v22 = vld [vmem:[%s785_s5 + $0x50] sm:$0xff]   ;;  %vm165_vm4 = vcmask 523264   ;;  %v116_v46 = vshrl.u32 %v115_v45, 7 }
   0x6   :  { %171 = vmatprep.subr.bf16.mxu1 %v577_v10  ;;  %201 = vmatprep.mubr.bf16.mxu1 %v609_v17  ;;  %v587_v19 = vld [vmem:[%s785_s5] sm:$0xff]   ;;  %v589_v21 = vld [vmem:[%s785_s5 + $0x8] sm:$0xff]   ;;  %v591_v23 = vld [vmem:[%s785_s5 + $0x10] sm:$0xff]   ;;  %vm480_vm5 = vcmask 64512  }
   0x7   :  { %524 = vmatprep.subr.bf16.mxu0 %v586_v18  ;;  %v592_v24 = vld [vmem:[%s785_s5 + $0x58] sm:$0xff]   ;;  %v594_v26 = vld [vmem:[%s785_s5 + $0x60] sm:$0xff]   ;;  %v596_v28 = vld [vmem:[%s785_s5 + $0x68] sm:$0xff]   ;;  %v117_v47 = vsub.s32 0, %v116_v46  ;;  %v121_v49 = vsub.s32 1, %v116_v46 }
   0x8   :  { %554 = vmatmul.mubr.msk.bf16.vlgmr.msra.gmra.mrb[0].mxu0 %vm50_vm3, %v35_v11  ;;  %v593_v25 = vld [vmem:[%s785_s5 + $0x18] sm:$0xff]   ;;  %v595_v27 = vld [vmem:[%s785_s5 + $0x20] sm:$0xff]   ;;  %v597_v39 = vld [vmem:[%s785_s5 + $0x28] sm:$0xff]  }
   0x9   :  { %172 = vmatpush1.bf16.msra.mxu1 %v579_v12  ;;  %525 = vmatpush3.bf16.msra.mxu0 %v587_v19  ;;  %v487_v29 = vld [vmem:[%s786_s2] ss:$0 sm:$0xff]  ;;  %v598_v40 = vld [vmem:[%s785_s5 + $0x70] sm:$0xff]   ;;  %v600_v42 = vld [vmem:[%s785_s5 + $0x78] sm:$0xff]  }
   0xa   :  { %173 = vmatprep.subr.bf16.mxu1 %v580_v13  ;;  %526 = vmatprep.subr.bf16.mxu0 %v588_v20  ;;  %v599_v41 = vld [vmem:[%s785_s5 + $0x30] sm:$0xff]   ;;  %v601_v43 = vld [vmem:[%s785_s5 + $0x38] sm:$0xff]   ;;  %v602_v44 = vld [vmem:[%s787_s7] sm:$0xff]  }
   0xb   :  { %v113_v48 = vld [vmem:[%s788_s4] sm:$0x3]  ;;  %v603_v3 = vld [vmem:[%s787_s7 + $0x8] sm:$0xff]   ;;  %v604_v4 = vld [vmem:[%s787_s7 + $0x10] sm:$0xff]  }
   0xc   :  { %v118_v50 = vrot.slane %v113_v48, %v117_v47  ;;  %v122_v51 = vrot.slane %v113_v48, %v121_v49  ;;  %v605_v5 = vld [vmem:[%s787_s7 + $0x18] sm:$0xff]   ;;  %v499_v7 = vld [vmem:[%s789_s6] ss:$0 sm:$0xff] }
   0xd   :  { %174 = vmatpush1.bf16.msra.mxu1 %v582_v14  ;;  %527 = vmatpush3.bf16.msra.mxu0 %v589_v21  ;;  %v516_v17 = vld [vmem:[%s790_s8] ss:$0 sm:$0xff] }
   0xe   :  { %175 = vmatprep.subr.bf16.mxu1 %v583_v15  ;;  %528 = vmatprep.subr.bf16.mxu0 %v590_v22 }
  0x11   :  { %176 = vmatpush1.bf16.msra.mxu1 %v585_v16  ;;  %529 = vmatpush3.bf16.msra.mxu0 %v591_v23 }
  0x12   :  { %557 = vmatprep.subr.bf16.mxu1 %v606_v0  ;;  %530 = vmatprep.subr.bf16.mxu0 %v592_v24 }
  0x15   :  { %531 = vmatpush3.bf16.msra.mxu0 %v593_v25 }
  0x16   :  { %532 = vmatprep.subr.bf16.mxu0 %v594_v26 }
  0x19   :  { %533 = vmatpush3.bf16.msra.mxu0 %v595_v27 }
  0x1a   :  { %534 = vmatprep.subr.bf16.mxu0 %v596_v28 }
  0x1d   :  { %535 = vmatpush3.bf16.msra.mxu0 %v597_v39 }
  0x1e   :  { %536 = vmatprep.subr.bf16.mxu0 %v598_v40 }
  0x21   :  { %537 = vmatpush3.bf16.msra.mxu0 %v599_v41 }
  0x22   :  { %538 = vmatprep.subr.bf16.mxu0 %v600_v42 }
  0x25   :  { %539 = vmatpush3.bf16.msra.mxu0 %v601_v43 }
  0xdb   :  { %v95_v30 = vpop.f32.mrb[0].mxu0 }
  0xdc   :  { %v96_v31 = vadd.f32 %v487_v29, %v95_v30  ;;  %v555_v32 = vpop.f32.mrb[1].mxu0 }
  0xdd   :  { %v98_v33 = vpop.f32.mrb[2].mxu0 }
  0xde   :  { %v99_v34 = vadd.f32 %v487_v29, %v98_v33  ;;  %v556_v35 = vpop.f32.mrb[3].mxu0  ;;  %v102_v36 = vmax.f32 %v96_v31, 0.0 }
  0xe0   :  { %v103_v37 = vmax.f32 %v99_v34, 0.0 }
  0xe2   :  { %v104_v38 = vpack.c.bf16 %v103_v37, %v102_v36 }
  0xe4   :  { %498 = vmatmul.mubr.msk.bf16.vlgmr.msra.gmra.mrb[0].mxu1 %vm165_vm4, %v104_v38 }
  0xe5   :  { %565 = vmatprep.mubr.msk.bf16.mxu1 %vm608_vm2, %v606_v0  ;;  %558 = vmatpush3.bf16.msra.mxu1 %v602_v44 }
  0xe6   :  { %559 = vmatprep.subr.bf16.mxu1 %v606_v0 }
  0xe9   :  { %560 = vmatpush3.bf16.msra.mxu1 %v603_v3 }
  0xea   :  { %561 = vmatprep.subr.bf16.mxu1 %v606_v0 }
  0xed   :  { %562 = vmatpush3.bf16.msra.mxu1 %v604_v4 }
  0xee   :  { %563 = vmatprep.subr.bf16.mxu1 %v606_v0 }
  0xf1   :  { %564 = vmatpush3.bf16.msra.mxu1 %v605_v5 }
 0x1b7   :  { %v203_v52 = vpop.f32.mrb[0].mxu1 }
 0x1b8   :  { %v204_v53 = vadd.f32 %v203_v52, %v118_v50  ;;  %v205_v54 = vpop.f32.mrb[1].mxu1 }
 0x1b9   :  { %v206_v55 = vadd.f32 %v205_v54, %v122_v51  ;;  %v207_v56 = vpop.f32.mrb[2].mxu1 }
 0x1ba   :  { %v208_v57 = vadd.f32 %v207_v56, %v118_v50  ;;  %v209_v58 = vpop.f32.mrb[3].mxu1  ;;  %v212_v60 = vmax.f32 %v204_v53, 0.0 }
 0x1bb   :  { %v210_v59 = vadd.f32 %v209_v58, %v122_v51  ;;  %v213_v62 = vmax.f32 %v206_v55, 0.0 }
 0x1bc   :  { %v214_v61 = vmax.f32 %v208_v57, 0.0 }
 0x1bd   :  { %v215_v63 = vmax.f32 %v210_v59, 0.0 }
 0x1be   :  { %v216_v1 = vpack.c.bf16 %v214_v61, %v212_v60 }
 0x1bf   :  { %v217_v2 = vpack.c.bf16 %v215_v63, %v213_v62 }
 0x1c1   :  { %385 = vmatprep.mubr.bf16.mxu0 %v217_v2 }
 0x1c2   :  { %386 = vmatmul.mubr.bf16.vlgmr.msra.gmra.mrb[4].mxu0 %v216_v1 }
 0x295   :  { %v540_v6 = vpop.f32.mrb[4].mxu0 }
 0x296   :  { %v541_v8 = vpop.f32.mrb[5].mxu0 }
 0x297   :  { %v542_v9 = vadd.f32 %v541_v8, %v540_v6  ;;  %v543_v10 = vpop.f32.mrb[6].mxu0 }
 0x298   :  { %v544_v11 = vpop.f32.mrb[7].mxu0 }
 0x299   :  { %v388_v12 = vadd.f32 %v542_v9, %v499_v7  ;;  %v545_v13 = vadd.f32 %v544_v11, %v543_v10 }
 0x29b   :  { %v391_v14 = vadd.f32 %v545_v13, %v499_v7  ;;  %v394_v15 = vmax.f32 %v388_v12, 0.0 }
 0x29d   :  { %v395_v16 = vmax.f32 %v391_v14, 0.0 }
 0x29f   :  { %v396_v0 = vpack.c.bf16 %v395_v16, %v394_v15 }
 0x2a1   :  { %566 = vmatmul.mubr.msk.bf16.vlgmr.msra.gmra.mrb[4].mxu1 %vm165_vm4, %v396_v0 }
 0x374   :  { %v473_v18 = vpop.f32.mrb[4].mxu1 }
 0x375   :  { %v474_v19 = vadd.f32 %v516_v17, %v473_v18  ;;  %v567_v20 = vpop.f32.mrb[5].mxu1 }
 0x376   :  { %v476_v21 = vpop.f32.mrb[6].mxu1 }
 0x377   :  { %481 = vst.msk [vmem:[%s791_s9] sm:$0xff] %vm480_vm5, %v474_v19  ;;  %v477_v22 = vadd.f32 %v516_v17, %v476_v21  ;;  %v568_v23 = vpop.f32.mrb[7].mxu1 }
 0x379   :  { %482 = vst.msk [vmem:[%s791_s9 + $0x8] sm:$0xff] %vm480_vm5, %v477_v22 }

</bundles_post_ra>
